<compile_context>
chip_gen: v7x
topology: tpu7x:2x2x1
jax: 0.10.0
libtpu: 0.0.40
codegen_flags: <defaults>
</compile_context>

<pallas_src>
import numpy as np
import jax
import jax.numpy as jnp
from jax import lax
from jax.experimental import pallas as pl
from jax.experimental.pallas import tpu as pltpu


# ----------------------- channels_first kernel ------------------------------
def _ln_channels_first_kernel(x_ref, wb_ref, o_ref, *, eps):
    # x_ref:  (1, C, T)  f32   (C on sublanes, spatial tile T on lanes)
    # wb_ref: (2, C, 1)  f32   row 0 = weight (gamma), row 1 = bias (beta)
    # o_ref:  (1, C, T)  f32
    x = x_ref[...]
    u = jnp.mean(x, axis=1, keepdims=True)                  # (1, 1, T)
    d = x - u
    s = jnp.mean(d * d, axis=1, keepdims=True)              # (1, 1, T)
    # rsqrt goes to the EUP (its own bundle slot); avoids VALU div + sqrt.
    y = d * lax.rsqrt(s + jnp.float32(eps))
    gamma = wb_ref[0][None, :, :]                            # (1, C, 1)
    beta = wb_ref[1][None, :, :]                             # (1, C, 1)
    o_ref[...] = gamma * y + beta


def layernorm_channels_first(x, weight, bias, *, eps=1e-6, max_hw_tile=512):
    """x: (B, C, H, W) f32, weight/bias: (C,) f32 -> (B, C, H, W) f32."""
    B, C, H, W = x.shape
    HW = H * W
    x3 = x.reshape(B, C, HW).astype(jnp.float32)            # free view, no transpose

    if HW % 128 == 0:
        T = min(HW, max_hw_tile)                             # lane-dense tile
    else:
        T = HW                                               # full-dim block (allowed)
    grid = (B, pl.cdiv(HW, T))

    # One affine slab -> one DMA per grid step instead of two tiny ones.
    wb = jnp.stack([weight, bias]).astype(jnp.float32)[:, :, None]   # (2, C, 1)

    kernel = lambda *refs: _ln_channels_first_kernel(*refs, eps=eps)
    out = pl.pallas_call(
        kernel,
        out_shape=jax.ShapeDtypeStruct((B, C, HW), jnp.float32),
        grid_spec=pltpu.PrefetchScalarGridSpec(
            num_scalar_prefetch=0,
            grid=grid,
            in_specs=[
                pl.BlockSpec((1, C, T), lambda b, t: (b, 0, t)),
                pl.BlockSpec((2, C, 1), lambda b, t: (0, 0, 0)),
            ],
            out_specs=pl.BlockSpec((1, C, T), lambda b, t: (b, 0, t)),
        ),
        compiler_params=pltpu.CompilerParams(
            dimension_semantics=("parallel", "parallel"),
        ),
    )(x3, wb)
    return out.reshape(B, C, H, W)


# ----------------------- channels_last kernel -------------------------------
def _ln_channels_last_kernel(x_ref, wb_ref, o_ref, *, eps):
    # x_ref:  (TM, C)  f32   (rows = flattened leading dims, C on lanes)
    # wb_ref: (2, C)   f32   row 0 = weight, row 1 = bias
    # o_ref:  (TM, C)  f32
    x = x_ref[...]
    u = jnp.mean(x, axis=-1, keepdims=True)
    d = x - u
    s = jnp.mean(d * d, axis=-1, keepdims=True)
    y = d * lax.rsqrt(s + jnp.float32(eps))
    o_ref[...] = wb_ref[0:1, :] * y + wb_ref[1:2, :]


def layernorm_channels_last(x, weight, bias, *, eps=1e-6, max_row_tile=256):
    """x: (..., C) f32, weight/bias: (C,) f32 -> (..., C) f32."""
    orig_shape = x.shape
    C = orig_shape[-1]
    N = int(np.prod(orig_shape[:-1]))
    x2 = x.reshape(N, C).astype(jnp.float32)

    if N % 8 == 0:
        TM = max(8, (min(N, max_row_tile) // 8) * 8)
    else:
        TM = N                                               # full-dim block
    grid = (pl.cdiv(N, TM),)

    wb = jnp.stack([weight, bias]).astype(jnp.float32)       # (2, C)

    kernel = lambda *refs: _ln_channels_last_kernel(*refs, eps=eps)
    out = pl.pallas_call(
        kernel,
        out_shape=jax.ShapeDtypeStruct((N, C), jnp.float32),
        grid_spec=pltpu.PrefetchScalarGridSpec(
            num_scalar_prefetch=0,
            grid=grid,
            in_specs=[
                pl.BlockSpec((TM, C), lambda i: (i, 0)),
                pl.BlockSpec((2, C), lambda i: (0, 0)),
            ],
            out_specs=pl.BlockSpec((TM, C), lambda i: (i, 0)),
        ),
        compiler_params=pltpu.CompilerParams(
            dimension_semantics=("parallel",),
        ),
    )(x2, wb)
    return out.reshape(orig_shape)


def layer_norm_forward(x, weight, bias, *, eps=1e-6, data_format="channels_first"):
    """Forward pass of the PyTorch LayerNorm module."""
    if data_format == "channels_first":
        return layernorm_channels_first(x, weight, bias, eps=eps)
    elif data_format == "channels_last":
        return layernorm_channels_last(x, weight, bias, eps=eps)
    raise NotImplementedError(data_format)


# ------------------------- pure-JAX references -------------------------------
def _ref_channels_first(x, w, b, eps=1e-6):
    u = x.mean(axis=1, keepdims=True)
    s = ((x - u) ** 2).mean(axis=1, keepdims=True)
    y = (x - u) / jnp.sqrt(s + eps)
    return w[None, :, None, None] * y + b[None, :, None, None]


def _ref_channels_last(x, w, b, eps=1e-6):
    u = x.mean(axis=-1, keepdims=True)
    s = ((x - u) ** 2).mean(axis=-1, keepdims=True)
    y = (x - u) / jnp.sqrt(s + eps)
    return w * y + b


# ---------------------------------- main --------------------------------------
if __name__ == "__main__":
    key = jax.random.PRNGKey(0)
    k1, k2, k3, k4, k5, k6 = jax.random.split(key, 6)

    # --- channels_first (module default): x = (B, C, H, W) = (2, 4, 16, 16) ---
    B, C, H, W = 2, 4, 16, 16
    x = jax.random.normal(k1, (B, C, H, W), jnp.float32)
    w_cf = 1.0 + 0.1 * jax.random.normal(k2, (C,), jnp.float32)
    b_cf = 0.1 * jax.random.normal(k3, (C,), jnp.float32)

    out_cf = jax.block_until_ready(
        layer_norm_forward(x, w_cf, b_cf, data_format="channels_first"))
    ref_cf = _ref_channels_first(x, w_cf, b_cf)
    assert out_cf.shape == x.shape
    np.testing.assert_allclose(np.asarray(out_cf), np.asarray(ref_cf),
                               rtol=1e-4, atol=1e-4)

    # --- larger channels_first case: multi-step grid (both TCs usable on v7x) ---
    B2, C2, H2, W2 = 2, 64, 32, 32
    x2 = jax.random.normal(k4, (B2, C2, H2, W2), jnp.float32)
    w2 = 1.0 + 0.1 * jax.random.normal(k5, (C2,), jnp.float32)
    b2 = 0.1 * jax.random.normal(k6, (C2,), jnp.float32)
    out2 = jax.block_until_ready(
        layer_norm_forward(x2, w2, b2, data_format="channels_first"))
    ref2 = _ref_channels_first(x2, w2, b2)
    np.testing.assert_allclose(np.asarray(out2), np.asarray(ref2),
                               rtol=1e-4, atol=1e-4)

    # --- channels_last branch: x = (B, H, W, C) = (2, 8, 8, 32) ---
    x_cl = jax.random.normal(k1, (2, 8, 8, 32), jnp.float32)
    w_cl = 1.0 + 0.1 * jax.random.normal(k2, (32,), jnp.float32)
    b_cl = 0.1 * jax.random.normal(k3, (32,), jnp.float32)
    out_cl = jax.block_until_ready(
        layer_norm_forward(x_cl, w_cl, b_cl, data_format="channels_last"))
    ref_cl = _ref_channels_last(x_cl, w_cl, b_cl)
    np.testing.assert_allclose(np.asarray(out_cl), np.asarray(ref_cl),
                               rtol=1e-4, atol=1e-4)

    print("KERNEL_OK")
</pallas_src>

<mosaic_0001>
module attributes {stable_mosaic.version = 11 : i64} {
  func.func @_lambda_(%arg0: i32, %arg1: i32, %arg2: memref<1x4x256xf32, #tpu.memory_space<vmem>>, %arg3: memref<2x4x1xf32, #tpu.memory_space<vmem>>, %arg4: memref<1x4x256xf32, #tpu.memory_space<vmem>>) attributes {dimension_semantics = [#tpu.dimension_semantics<parallel>, #tpu.dimension_semantics<parallel>], iteration_bounds = array<i64: 2, 1>, scalar_prefetch = 0 : i64, scratch_operands = 0 : i64, tpu.core_type = #tpu.core_type<tc>, window_params = [{transform_indices = @transform_0, window_bounds = array<i64: 1, 4, 256>}, {pipeline_mode = #tpu.pipeline_mode<synchronous>, transform_indices = @transform_1, window_bounds = array<i64: 2, 4, 1>}, {transform_indices = @transform_2, window_bounds = array<i64: 1, 4, 256>}]} {
    %c0 = arith.constant 0 : index
    %c0_0 = arith.constant 0 : index
    %c0_1 = arith.constant 0 : index
    %0 = vector.load %arg2[%c0, %c0_0, %c0_1] : memref<1x4x256xf32, #tpu.memory_space<vmem>>, vector<1x4x256xf32>
    %cst = arith.constant dense<0.000000e+00> : vector<1x256xf32>
    %1 = vector.multi_reduction <add>, %0, %cst [1] : vector<1x4x256xf32> to vector<1x256xf32>
    %2 = vector.shape_cast %1 : vector<1x256xf32> to vector<1x1x256xf32>
    %cst_2 = arith.constant 4.000000e+00 : f32
    %3 = vector.broadcast %cst_2 : f32 to vector<1x1x256xf32>
    %4 = arith.divf %2, %3 : vector<1x1x256xf32>
    %5 = vector.broadcast %4 : vector<1x1x256xf32> to vector<1x4x256xf32>
    %6 = arith.subf %0, %5 : vector<1x4x256xf32>
    %7 = arith.mulf %6, %6 : vector<1x4x256xf32>
    %cst_3 = arith.constant dense<0.000000e+00> : vector<1x256xf32>
    %8 = vector.multi_reduction <add>, %7, %cst_3 [1] : vector<1x4x256xf32> to vector<1x256xf32>
    %9 = vector.shape_cast %8 : vector<1x256xf32> to vector<1x1x256xf32>
    %cst_4 = arith.constant 4.000000e+00 : f32
    %10 = vector.broadcast %cst_4 : f32 to vector<1x1x256xf32>
    %11 = arith.divf %9, %10 : vector<1x1x256xf32>
    %cst_5 = arith.constant 9.99999997E-7 : f32
    %12 = vector.broadcast %cst_5 : f32 to vector<1x1x256xf32>
    %13 = arith.addf %11, %12 : vector<1x1x256xf32>
    %14 = math.rsqrt %13 : vector<1x1x256xf32>
    %15 = vector.broadcast %14 : vector<1x1x256xf32> to vector<1x4x256xf32>
    %16 = arith.mulf %6, %15 : vector<1x4x256xf32>
    %c0_6 = arith.constant 0 : index
    %c0_7 = arith.constant 0 : index
    %c0_8 = arith.constant 0 : index
    %17 = vector.load %arg3[%c0_6, %c0_7, %c0_8] : memref<2x4x1xf32, #tpu.memory_space<vmem>>, vector<1x4x1xf32>
    %18 = vector.shape_cast %17 : vector<1x4x1xf32> to vector<4x1xf32>
    %19 = vector.shape_cast %18 : vector<4x1xf32> to vector<1x4x1xf32>
    %c1 = arith.constant 1 : index
    %c0_9 = arith.constant 0 : index
    %c0_10 = arith.constant 0 : index
    %20 = vector.load %arg3[%c1, %c0_9, %c0_10] : memref<2x4x1xf32, #tpu.memory_space<vmem>>, vector<1x4x1xf32>
    %21 = vector.shape_cast %20 : vector<1x4x1xf32> to vector<4x1xf32>
    %22 = vector.shape_cast %21 : vector<4x1xf32> to vector<1x4x1xf32>
    %23 = vector.broadcast %19 : vector<1x4x1xf32> to vector<1x4x256xf32>
    %24 = arith.mulf %23, %16 : vector<1x4x256xf32>
    %25 = vector.broadcast %22 : vector<1x4x1xf32> to vector<1x4x256xf32>
    %26 = arith.addf %24, %25 : vector<1x4x256xf32>
    %c0_11 = arith.constant 0 : index
    %c0_12 = arith.constant 0 : index
    %c0_13 = arith.constant 0 : index
    %27 = vector.load %arg4[%c0_11, %c0_12, %c0_13] : memref<1x4x256xf32, #tpu.memory_space<vmem>>, vector<1x4x256xf32>
    tpu.vector_store %arg4[%c0_11, %c0_12, %c0_13], %26 {strides = array<i32>} : memref<1x4x256xf32, #tpu.memory_space<vmem>>, vector<1x4x256xf32>,
    return
  }
  func.func @transform_0(%arg0: i32, %arg1: i32) -> (i32, i32, i32) {
    %c0_i32 = arith.constant 0 : i32
    %c0_i32_0 = arith.constant 0 : i32
    return %arg0, %c0_i32, %arg1 : i32, i32, i32
  }
  func.func @transform_1(%arg0: i32, %arg1: i32) -> (i32, i32, i32) {
    %c0_i32 = arith.constant 0 : i32
    %c0_i32_0 = arith.constant 0 : i32
    %c0_i32_1 = arith.constant 0 : i32
    %c0_i32_2 = arith.constant 0 : i32
    return %c0_i32, %c0_i32_0, %c0_i32_1 : i32, i32, i32
  }
  func.func @transform_2(%arg0: i32, %arg1: i32) -> (i32, i32, i32) {
    %c0_i32 = arith.constant 0 : i32
    %c0_i32_0 = arith.constant 0 : i32
    return %arg0, %c0_i32, %arg1 : i32, i32, i32
  }
}

</mosaic_0001>

<bundles_post_ra>
// kernel: tpu_custom_call.1
= control target key start
LH: loop header
LB: loop body
LE: loop exit
PB: predicated region body
PF: predicated region fallthrough
CT: control target
= control target key end

     0   :  { %7 = vsyncpa [#allocation3], 0  ;;  %s767_s0 = inlined_call_operand.hbm [shape: f32[2,4,256], index: 0, kind: input, shape index: {}]   ;;  %s768_s1 = inlined_call_operand.vmem [shape: f32[2,4,1], index: 1, kind: input, shape index: {}]   ;;  %s769_s2 = inlined_call_operand.hbm [shape: f32[2,4,256], index: 2, kind: output, shape index: {}]  }
   0x1   :  { %9 = vsyncpa [#allocation3 + $0x1], 0 }
   0x2   :  { %10 = vsyncpa [#allocation4], 0 }
   0x3   :  { %12 = vsyncpa [#allocation4 + $0x1], 0  ;;  %s581_s9 = smov 0   ;;  %s583_s10 = smov 0  }
   0x4   :  { %s585_s11 = smov 0   ;;  %s587_s12 = smov 0  }
   0x5   :  { %s589_s13 = smov 0   ;;  %s591_s14 = smov 0  }
   0x6 LB: > { %s362_s15 = sadd.s32 4294967295, %s561_s14   ;;  %s363_s16 = sadd.s32 4294967294, %s561_s14   ;;  %s561_s14 = sphi %s591_s14, %s18_s14   ;;  %s557_s13 = sphi %s589_s13, %s785_s13   ;;  %s553_s12 = sphi %s587_s12, %s784_s12   ;;  %s549_s11 = sphi %s585_s11, %s783_s11   ;;  %s545_s10 = sphi %s583_s10, %s782_s10   ;;  %s541_s9 = sphi %s581_s9, %s781_s9  }
   0x7   : > { %s30_s17 = sadd.s32 1, %s557_s13  ;;  %s39_s18 = sadd.s32 1, %s549_s11 }
   0x8   : > { %p32_p0 = scmp.ge.s32.totalorder %s30_s17, 2  ;;  %p46_p1 = scmp.ne.s32.totalorder %s549_s11, %s545_s10 }
   0x9   : > { %p47_p2 = scmp.eq.s32.totalorder %s561_s14, 0  ;;  %p52_p3 = scmp.ne.s32.totalorder %s545_s10, %s541_s9 }
   0xa   : > { %s787_s17 = smov (%p32_p0, %s30_s17), 0  ;;  %p53_p5 = scmp.eq.s32.totalorder %s362_s15, 0 }
   0xb   : > { %p622_p4 = por %p47_p2, %p46_p1  ;;  %s34_s20 = ssub.s32 %s557_s13, %s787_s17 }
   0xc   : > { %p99_p6 = scmp.eq.s32.totalorder %s362_s15, 1  ;;  %p37_p7 = scmp.eq.s32.totalorder %s34_s20, 0 }
   0xd   : > { %p628_p8 = por %p53_p5, %p52_p3  ;;  %p105_p10 = scmp.eq.s32.totalorder %s363_s16, 1 }
   0xe   : > { %p632_p9 = por %p99_p6, %p46_p1  ;;  %p392_p13 = scmp.lt.s32.totalorder %s561_s14, 2 }
   0xf   : > { %s637_s23 = scalar_select %p37_p7, %s549_s11, %s39_s18  }
  0x10   : > { %s773_s22 = scalar_select %p632_p9, 1, 0 }
  0x11   : > { %p639_p11 = por %p105_p10, %p52_p3  ;;  %s128_s25 = sand.u32 1, %s549_s11  }
  0x12   : > { %s366_s26 = sshll.u32 %s128_s25, 3  ;;  %s378_s27 = sshll.u32 %s557_s13, 7 }
  0x13   : > { %s774_s24 = scalar_select %p639_p11, 1, 0 }
  0x14   : > { %s650_s30 = scalar_lea.hbm %s767_s0, %s378_s27  ;;  %s132_s3 = scalar_lea.vmem [#allocation2], %s366_s26 }
  0x15   : > { %s142_s4 = sshll.u32 %s132_s3, 4  ;;  %p656_p0 = pnand %p392_p13, %p622_p4  ;;  %s652_s4 = int_to_ptr.vmem [resolvable:$true] %s142_s4 }
  0x16   : > { %s129_s6 = scalar_lea.sflag [#allocation3], %s128_s25  ;;  %s449_s7 = scalar_lea.hbm %s650_s30, 128 }
  0x17   : > { %p450_p3 = scmp.ne.s32.totalorder %s650_s30, %s449_s7  ;;  %p451_p5 = pneg %p656_p0 }
  0x18   : > { %s454_s16 = scalar_lea.hbm %s767_s0, 256  ;;  %p455_p4 = scmp.lt.u32.totalorder %s650_s30, %s767_s0 }
  0x19   : > { %p452_p6 = pnand %p451_p5, %p450_p3  ;;  %p456_p10 = scmp.lt.u32.totalorder %s454_s16, %s449_s7 }
  0x1a   : > { %p458_p12 = scmp.lt.u32.totalorder %s449_s7, %s650_s30 }
  0x1b   : > { %p453_p7 = pneg %p452_p6  ;;  %p457_p13 = por %p456_p10, %p455_p4 }
  0x1d   : > { %p459_p1 = por %p458_p12, %p457_p13 }
  0x1f   : > { %p460_p2 = pnand %p459_p1, %p453_p7 }
  0x21   : > { %463 = shalt.err (!%p460_p2)
}
  0x22   : > { %s464_s20 = scalar_lea.vmem %s652_s4, 128  ;;  %s563_s25 = smov [#allocation2]  }
  0x23   : > { %p465_p3 = scmp.ne.s32.totalorder %s652_s4, %s464_s20  ;;  %s469_s26 = sshll.u32 %s563_s25, 4  ;;  %s470_s26 = int_to_ptr.vmem [resolvable:$false] %s469_s26 }
  0x24   : > { %s471_s27 = scalar_lea.vmem %s470_s26, 256  ;;  %p472_p9 = scmp.lt.s32.totalorder %s652_s4, %s470_s26 }
  0x25   : > { %p467_p6 = pnand %p465_p3, %p451_p5  ;;  %p473_p4 = scmp.lt.s32.totalorder %s471_s27, %s464_s20 }
  0x27   : > { %p468_p11 = pneg %p467_p6  ;;  %p474_p10 = por %p473_p4, %p472_p9 }
  0x29   : > { %p475_p12 = pnand %p474_p10, %p468_p11 }
  0x2b   : > { %478 = shalt.err (!%p475_p12)
}
  0x2c   : > { %387 = dma.hbm_to_vmem [thread:$0]  (!%p656_p0), %s650_s30, 128, %s652_s4, %s129_s6  }
  0x2d   : > { %p776_p1 = scmp.lt.s32.totalorder %s561_s14, 3  ;;  %p777_p2 = scmp.ge.s32.totalorder %s561_s14, 1 }
  0x2f   : > { %p148_p5 = pnand %p777_p2, %p776_p1 }
  0x30   : > { %s692_s28 = sand.u32 (!%p148_p5), 1, %s545_s10  }
  0x31   : > { %151 = sbr.rel (%p148_p5) target bundleno = 209 (0xd1), region = 28  ;;  %s370_s29 = sshll.u32 (!%p148_p5), %s692_s28, 3 }
  0x32   : > { %s154_s3 = scalar_lea.sflag (!%p148_p5), [#allocation3], %s692_s28  ;;  %s157_s5 = scalar_lea.vmem (!%p148_p5), [#allocation2], %s370_s29 }
  0x38   : > { %532 = dma.done.wait (%p628_p8), %s154_s3, 128  }
  0x39   : > { %534 = vsyncadd (%p628_p8), %s154_s3, 4294967168  ;;  %v564_v0 = vmov 0   ;;  %v236_v1 = vld [vmem:[%s768_s1] sm:$0xf]  ;;  %v372_v2 = vld [vmem:[%s768_s1 + $0x4] sm:$0xf] }
  0x3a   : > { %443 = vset.pattern.permute.xlu0 %v564_v0  ;;  %v180_v3 = vld [vmem:[%s157_s5] sm:$0xff]  ;;  %vm184_vm0 = vcmask 1043456   ;;  %s379_s21 = sshll.u32 %s553_s12, 7  ;;  %s177_s8 = scalar_lea.vmem [#allocation5], %s370_s29 }
  0x3b   : > { %241 = vperm.xlu0 %443, %v236_v1   ;;  %v182_v4 = vcombine.high %v180_v3, %v180_v3  ;;  %v185_v5 = vsel %vm184_vm0, %v180_v3, 0.0  ;;  %s278_s15 = sshll.u32 %s177_s8, 4  ;;  %s718_s19 = scalar_lea.hbm %s769_s2, %s379_s21  ;;  %s720_s15 = int_to_ptr.vmem [resolvable:$true] %s278_s15 }
  0x3c   : > { %v186_v7 = vrot.slane %v185_v5, 4  ;;  %s262_s20 = scalar_lea.sflag [#allocation4], %s692_s28  ;;  %s479_s25 = scalar_lea.vmem %s720_s15, 128 }
  0x3d   : > { %v192_v6 = vsel %vm184_vm0, %v182_v4, 0.0  ;;  %p480_p8 = scmp.ne.s32.totalorder %s720_s15, %s479_s25  ;;  %p778_p9 = scmp.ne.s32.totalorder %s773_s22, 0 }
  0x3e   : > { %v193_v8 = vrot.slane %v192_v6, 4  ;;  %v187_v9 = vadd.f32 %v186_v7, %v185_v5  ;;  %s565_s12 = smov [#allocation5]  }
  0x3f   : > { %251 = vperm.xlu0 %443, %v372_v2   ;;  %p481_p11 = pnand %p480_p8, %p778_p9  ;;  %s483_s26 = sshll.u32 %s565_s12, 4  ;;  %s484_s26 = int_to_ptr.vmem [resolvable:$false] %s483_s26 }
  0x40   : > { %v194_v10 = vadd.f32 %v193_v8, %v192_v6  ;;  %v188_v11 = vrot.slane %v187_v9, 2  ;;  %s485_s27 = scalar_lea.vmem %s484_s26, 256  ;;  %p486_p7 = scmp.lt.s32.totalorder %s720_s15, %s484_s26 }
  0x41   : > { %p482_p0 = pneg %p481_p11  ;;  %p487_p13 = scmp.lt.s32.totalorder %s485_s27, %s479_s25 }
  0x42   : > { %v195_v12 = vrot.slane %v194_v10, 2  ;;  %v189_v13 = vadd.f32 %v188_v11, %v187_v9 }
  0x43   : > { %p488_p3 = por %p487_p13, %p486_p7 }
  0x44   : > { %v196_v14 = vadd.f32 %v195_v12, %v194_v10  ;;  %v190_v15 = vrot.slane %v189_v13, 1 }
  0x45   : > { %p489_p6 = pnand %p488_p3, %p482_p0 }
  0x46   : > { %v197_v16 = vrot.slane %v196_v14, 1  ;;  %v191_v17 = vadd.f32 %v190_v15, %v189_v13 }
  0x48   : > { %v198_v18 = vadd.f32 %v197_v16, %v196_v14  ;;  %v200_v19 = vmul.f32 0.25, %v191_v17 }
  0x4a   : > { %v201_v20 = vmul.f32 0.25, %v198_v18 }
  0x4c   : > { %v204_v21 = vcombine.low %v200_v19, %v201_v20 }
  0x4e   : > { %v206_v22 = vsub.f32 %v180_v3, %v204_v21 }
  0x50   : > { %v207_v23 = vmul.f32 %v206_v22, %v206_v22 }
  0x52   : > { %v209_v24 = vcombine.high %v207_v23, %v207_v23  ;;  %v211_v25 = vsel %vm184_vm0, %v207_v23, 0.0 }
  0x53   : > { %v212_v27 = vrot.slane %v211_v25, 4 }
  0x54   : > { %v218_v26 = vsel %vm184_vm0, %v209_v24, 0.0 }
  0x55   : > { %v219_v28 = vrot.slane %v218_v26, 4  ;;  %v213_v29 = vadd.f32 %v212_v27, %v211_v25 }
  0x57   : > { %v220_v30 = vadd.f32 %v219_v28, %v218_v26  ;;  %v214_v31 = vrot.slane %v213_v29, 2 }
  0x59   : > { %v221_v32 = vrot.slane %v220_v30, 2  ;;  %v215_v33 = vadd.f32 %v214_v31, %v213_v29 }
  0x5b   : > { %v222_v34 = vadd.f32 %v221_v32, %v220_v30  ;;  %v216_v35 = vrot.slane %v215_v33, 1 }
  0x5d   : > { %v223_v36 = vrot.slane %v222_v34, 1  ;;  %v217_v37 = vadd.f32 %v216_v35, %v215_v33 }
  0x5f   : > { %v224_v38 = vadd.f32 %v223_v36, %v222_v34  ;;  %v225_v39 = vmul.f32 0.25, %v217_v37 }
  0x61   : > { %v226_v40 = vmul.f32 0.25, %v224_v38  ;;  %v227_v41 = vadd.f32 1e-06, %v225_v39 }
  0x63   : > { %v228_v42 = vadd.f32 1e-06, %v226_v40  ;;  %445 = vrsqrt.f32 %v227_v41 }
  0x65   : > { %447 = vrsqrt.f32 %v228_v42 }
  0x6d   : > { %v446_v43 = vpop.eup %445 }
  0x6f   : > { %v448_v44 = vpop.eup %447 }
  0x70   : > { %v233_v45 = vcombine.low %v446_v43, %v448_v44 }
  0x72   : > { %v235_v46 = vmul.f32 %v233_v45, %v206_v22 }
  0x74   : > { %v245_v47 = vcombine.high %v235_v46, %v235_v46 }
  0xba   : > { %v242_v48 = vpop.permute.xlu0 %241 }
  0xbb   : > { %v247_v49 = vmul.f32 %v242_v48, %v235_v46  ;;  %v248_v50 = vmul.f32 %v245_v47, %v242_v48 }
  0xbe   : > { %v252_v51 = vpop.permute.xlu0 %251 }
  0xbf   : > { %v254_v52 = vadd.f32 %v252_v51, %v247_v49  ;;  %v255_v53 = vadd.f32 %v252_v51, %v248_v50 }
  0xc1   : > { %v258_v54 = vcombine.low %v254_v52, %v255_v53 }
  0xc3   : > { %260 = vst [vmem:[%s177_s8] sm:$0xff] %v258_v54 }
  0xc4   : > { %492 = shalt.err (!%p489_p6)
}
  0xc5   : > { %s493_s28 = scalar_lea.hbm %s718_s19, 128  ;;  %s497_s5 = scalar_lea.hbm %s769_s2, 256 }
  0xc6   : > { %p494_p4 = scmp.ne.s32.totalorder %s718_s19, %s493_s28  ;;  %p498_p1 = scmp.lt.u32.totalorder %s718_s19, %s769_s2 }
  0xc7   : > { %p499_p2 = scmp.lt.u32.totalorder %s497_s5, %s493_s28  ;;  %p501_p8 = scmp.lt.u32.totalorder %s493_s28, %s718_s19 }
  0xc8   : > { %p495_p10 = pnand %p494_p4, %p778_p9 }
  0xc9   : > { %p500_p5 = por %p499_p2, %p498_p1 }
  0xca   : > { %p496_p12 = pneg %p495_p10 }
  0xcb   : > { %p502_p11 = por %p501_p8, %p500_p5 }
  0xcd   : > { %p503_p0 = pnand %p502_p11, %p496_p12 }
  0xcf   : > { %506 = shalt.err (!%p503_p0)
}
  0xd0   : > { %382 = dma.vmem_to_hbm [thread:$0]  (%p778_p9), %s720_s15, 128, %s718_s19, %s262_s20  }
  0xd1 PF: > { %s290_s6 = sand.u32 1, %s541_s9   ;;  %p779_p7 = scmp.ne.s32.totalorder %s774_s24, 0 }
  0xd2   : > { %p780_p13 = scmp.ge.s32.totalorder %s561_s14, 2  ;;  %s291_s7 = scalar_lea.sflag [#allocation4], %s290_s6 }
  0xd4   : > { %p389_p3 = pnand %p780_p13, %p779_p7 }
  0xd6   : > { %536 = dma.done.wait (!%p389_p3), %s291_s7, 128  }
  0xd7   : > { %538 = vsyncadd (!%p389_p3), %s291_s7, 4294967168  ;;  %s18_s14 = sadd.s32 1, %s561_s14   ;;  %s781_s9 = smov %s545_s10 }
  0xd8   : > { %p15_p6 = scmp.ge.s32.totalorder %s18_s14, 4   ;;  %s782_s10 = smov %s549_s11 }
  0xd9   : > { %s783_s11 = smov %s637_s23  ;;  %s784_s12 = smov %s557_s13 }
  0xda   : > { %s785_s13 = smov %s787_s17  ;;  %17 = sbr.rel (!%p15_p6) target bundleno = 6 (0x6), region = 74 }
  0xe1   :  { %296 = vsyncpa [#allocation3], 1 }
  0xe2   :  { %298 = vsyncpa [#allocation3 + $0x1], 1 }
  0xe3   :  { %299 = vsyncpa [#allocation4], 1 }
  0xe4   :  { %301 = vsyncpa [#allocation4 + $0x1], 1 }

</bundles_post_ra>
